<compile_context>
chip_gen: v7x
topology: tpu7x:2x2x1
jax: 0.10.0
libtpu: 0.0.40
codegen_flags: <defaults>
</compile_context>

<pallas_src>
import functools

import jax
import jax.numpy as jnp
from jax.experimental import pallas as pl
from jax.experimental.pallas import tpu as pltpu


def _instance_norm_kernel(x_ref, scale_ref, shift_ref, o_ref, *, eps, inv_hw, tr, align):
    # x_ref:     (TR, HW)  one tile of rows, each row = one (batch, channel)
    # scale_ref: (Rp, 1)   full per-row scale table, resident in VMEM (fetched once)
    # shift_ref: (Rp, 1)   full per-row shift table, resident in VMEM (fetched once)
    i = pl.program_id(0)
    row0 = pl.multiple_of(i * tr, align)

    x = x_ref[...].astype(jnp.float32)

    # Single sweep: row sums of x and x*x (XLU reductions; VALU mostly idle anyway).
    s = jnp.sum(x, axis=-1, keepdims=True)           # (TR, 1)
    ss = jnp.sum(x * x, axis=-1, keepdims=True)      # (TR, 1)

    mean = s * inv_hw
    # Biased variance (matches torch.var(unbiased) * (n-1)/n); clamp guards
    # against tiny negative values from E[x^2] - mean^2 cancellation.
    var = jnp.maximum(ss * inv_hw - mean * mean, 0.0)
    inv_std = jax.lax.rsqrt(var + eps)

    scale = scale_ref[pl.ds(row0, tr), :].astype(jnp.float32)   # (TR, 1)
    shift = shift_ref[pl.ds(row0, tr), :].astype(jnp.float32)   # (TR, 1)

    # Fold normalization + affine into out = x * a + b (2 ops/element).
    a = inv_std * scale
    b = shift - mean * a
    o_ref[...] = (x * a + b).astype(o_ref.dtype)


def _round_up(v, m):
    return ((v + m - 1) // m) * m


def _vmem_capacity_bytes():
    try:
        return int(pltpu.get_tpu_info().vmem_capacity_bytes)
    except Exception:
        return 64 << 20   # conservative fallback: v7x per-TensorCore VMEM


def _sublane_multiple(dtype):
    # Sub-32-bit dtypes pack along sublanes: f32 -> 8, bf16 -> 16, int8/fp8 -> 32.
    return max(8, 32 // max(1, jnp.dtype(dtype).itemsize))


def _choose_row_tile(rows, hw, dtype, vmem_capacity):
    """Row tile: multi-MiB blocks to amortize per-step overhead, generation-aware."""
    sub = _sublane_multiple(dtype)
    itemsize = jnp.dtype(dtype).itemsize
    # ~cap/16 per block (>= 4 MiB): ~4 MiB on v7x (64 MiB VMEM), ~8 MiB on v5e/v6e.
    target_block_bytes = max(4 << 20, vmem_capacity // 16)
    tr_budget = max(sub, (target_block_bytes // max(1, hw * itemsize)) // sub * sub)
    # Keep >= ~8 row tiles when the data allows it (v7x megacore load balance).
    tr_parallel = max(sub, _round_up(pl.cdiv(rows, 8), sub))
    tr = min(tr_budget, tr_parallel, _round_up(rows, sub))
    return int(tr), sub


def instance_norm(x, scale, shift, eps=1e-9):
    """x: (B, C, H, W) contiguous NCHW, scale/shift: (C,). Matches the PyTorch forward."""
    B, C, H, W = x.shape
    HW = H * W
    R = B * C
    itemsize = jnp.dtype(x.dtype).itemsize

    vmem_cap = _vmem_capacity_bytes()
    TR, sub = _choose_row_tile(R, HW, x.dtype, vmem_cap)
    num_tiles = int(pl.cdiv(R, TR))
    Rp = num_tiles * TR   # padded row count used only for the tiny param tables

    # Free view for contiguous NCHW; x itself is never padded or copied.
    x_rows = x.reshape(R, HW)

    # Per-row affine params, padded to a whole number of row tiles (Rp*4 bytes, tiny).
    scale_rows = jnp.broadcast_to(scale[None, :], (B, C)).reshape(R, 1)
    shift_rows = jnp.broadcast_to(shift[None, :], (B, C)).reshape(R, 1)
    if Rp != R:
        scale_rows = jnp.pad(scale_rows, ((0, Rp - R), (0, 0)), constant_values=1.0)
        shift_rows = jnp.pad(shift_rows, ((0, Rp - R), (0, 0)))

    # VMEM footprint: 2x in + 2x out blocks + f32 temporaries + resident param tables.
    block_bytes = TR * HW * itemsize
    temp_bytes = 2 * TR * HW * 4
    param_bytes = 2 * 2 * _round_up(Rp, 8) * 128 * 4
    needed = 4 * block_bytes + temp_bytes + param_bytes
    vmem_limit = min(vmem_cap * 3 // 4, max(needed + (2 << 20), 32 << 20))

    kernel = functools.partial(
        _instance_norm_kernel,
        eps=float(eps),
        inv_hw=1.0 / float(HW),
        tr=TR,
        align=sub,
    )

    out_rows = pl.pallas_call(
        kernel,
        out_shape=jax.ShapeDtypeStruct((R, HW), x.dtype),
        grid_spec=pltpu.PrefetchScalarGridSpec(
            num_scalar_prefetch=0,
            grid=(num_tiles,),
            in_specs=[
                pl.BlockSpec((TR, HW), lambda i: (i, 0)),
                # Constant block index -> fetched once, stays resident across the grid.
                pl.BlockSpec((Rp, 1), lambda i: (0, 0)),
                pl.BlockSpec((Rp, 1), lambda i: (0, 0)),
            ],
            out_specs=pl.BlockSpec((TR, HW), lambda i: (i, 0)),
        ),
        compiler_params=pltpu.CompilerParams(
            dimension_semantics=("parallel",),
            vmem_limit_bytes=int(vmem_limit),
        ),
        cost_estimate=pl.CostEstimate(
            flops=7 * R * HW,
            transcendentals=R,
            bytes_accessed=2 * R * HW * itemsize + 2 * Rp * 4,
        ),
    )(x_rows, scale_rows, shift_rows)

    return out_rows.reshape(B, C, H, W)


def instance_norm_ref(x, scale, shift, eps=1e-9):
    # Pure-JAX reference mirroring the PyTorch forward exactly.
    B, C, H, W = x.shape
    n = H * W
    t = x.reshape(B, C, n)
    mean = jnp.mean(t, axis=2)[:, :, None, None]
    var_unbiased = jnp.var(t, axis=2, ddof=1)[:, :, None, None]
    var = var_unbiased * ((n - 1) / float(n))
    out = (x - mean) / jnp.sqrt(var + eps)
    out = out * scale[None, :, None, None] + shift[None, :, None, None]
    return out


if __name__ == "__main__":
    key = jax.random.PRNGKey(0)
    k_x, k_scale = jax.random.split(key)

    B, C, H, W = 2, 4, 16, 16
    x = jax.random.normal(k_x, (B, C, H, W), dtype=jnp.float32)
    # Deterministic params mirroring _reset_parameters: scale ~ U[0,1), shift = 0.
    scale = jax.random.uniform(k_scale, (C,), dtype=jnp.float32)
    shift = jnp.zeros((C,), dtype=jnp.float32)

    out = jax.block_until_ready(instance_norm(x, scale, shift, eps=1e-9))

    ref = instance_norm_ref(x, scale, shift, eps=1e-9)
    assert out.shape == (B, C, H, W)
    max_err = jnp.max(jnp.abs(out - ref))
    assert jnp.allclose(out, ref, atol=1e-5, rtol=1e-5), f"max abs diff {max_err}"
    print("KERNEL_OK")
</pallas_src>

<mosaic_0001>
module attributes {stable_mosaic.version = 11 : i64} {
  func.func @_instance_norm_kernel(%arg0: i32, %arg1: memref<8x256xf32, #tpu.memory_space<vmem>>, %arg2: memref<8x1xf32, #tpu.memory_space<vmem>>, %arg3: memref<8x1xf32, #tpu.memory_space<vmem>>, %arg4: memref<8x256xf32, #tpu.memory_space<vmem>>) attributes {dimension_semantics = [#tpu.dimension_semantics<parallel>], iteration_bounds = array<i64: 1>, scalar_prefetch = 0 : i64, scratch_operands = 0 : i64, tpu.core_type = #tpu.core_type<tc>, window_params = [{transform_indices = @transform_0, window_bounds = array<i64: 8, 256>}, {pipeline_mode = #tpu.pipeline_mode<synchronous>, transform_indices = @transform_1, window_bounds = array<i64: 8, 1>}, {pipeline_mode = #tpu.pipeline_mode<synchronous>, transform_indices = @transform_2, window_bounds = array<i64: 8, 1>}, {transform_indices = @transform_3, window_bounds = array<i64: 8, 256>}]} {
    %c8_i32 = arith.constant 8 : i32
    %0 = arith.muli %arg0, %c8_i32 : i32
    %1 = tpu.assume_multiple %0, 8 : i32
    %c0 = arith.constant 0 : index
    %c0_0 = arith.constant 0 : index
    %2 = vector.load %arg1[%c0, %c0_0] : memref<8x256xf32, #tpu.memory_space<vmem>>, vector<8x256xf32>
    %cst = arith.constant dense<0.000000e+00> : vector<8xf32>
    %3 = vector.multi_reduction <add>, %2, %cst [1] : vector<8x256xf32> to vector<8xf32>
    %4 = vector.shape_cast %3 : vector<8xf32> to vector<8x1xf32>
    %5 = arith.mulf %2, %2 : vector<8x256xf32>
    %cst_1 = arith.constant dense<0.000000e+00> : vector<8xf32>
    %6 = vector.multi_reduction <add>, %5, %cst_1 [1] : vector<8x256xf32> to vector<8xf32>
    %7 = vector.shape_cast %6 : vector<8xf32> to vector<8x1xf32>
    %cst_2 = arith.constant 3.906250e-03 : f32
    %8 = vector.broadcast %cst_2 : f32 to vector<8x1xf32>
    %9 = arith.mulf %4, %8 : vector<8x1xf32>
    %cst_3 = arith.constant 3.906250e-03 : f32
    %10 = vector.broadcast %cst_3 : f32 to vector<8x1xf32>
    %11 = arith.mulf %7, %10 : vector<8x1xf32>
    %12 = arith.mulf %9, %9 : vector<8x1xf32>
    %13 = arith.subf %11, %12 : vector<8x1xf32>
    %cst_4 = arith.constant 0.000000e+00 : f32
    %14 = vector.broadcast %cst_4 : f32 to vector<8x1xf32>
    %15 = arith.maximumf %13, %14 : vector<8x1xf32>
    %cst_5 = arith.constant 9.99999971E-10 : f32
    %16 = vector.broadcast %cst_5 : f32 to vector<8x1xf32>
    %17 = arith.addf %15, %16 : vector<8x1xf32>
    %18 = math.rsqrt %17 : vector<8x1xf32>
    %19 = arith.index_cast %1 : i32 to index
    %c0_6 = arith.constant 0 : index
    %20 = vector.load %arg2[%19, %c0_6] : memref<8x1xf32, #tpu.memory_space<vmem>>, vector<8x1xf32>
    %21 = arith.index_cast %1 : i32 to index
    %c0_7 = arith.constant 0 : index
    %22 = vector.load %arg3[%21, %c0_7] : memref<8x1xf32, #tpu.memory_space<vmem>>, vector<8x1xf32>
    %23 = arith.mulf %18, %20 : vector<8x1xf32>
    %24 = arith.mulf %9, %23 : vector<8x1xf32>
    %25 = arith.subf %22, %24 : vector<8x1xf32>
    %26 = vector.broadcast %23 : vector<8x1xf32> to vector<8x256xf32>
    %27 = arith.mulf %2, %26 : vector<8x256xf32>
    %28 = vector.broadcast %25 : vector<8x1xf32> to vector<8x256xf32>
    %29 = arith.addf %27, %28 : vector<8x256xf32>
    %c0_8 = arith.constant 0 : index
    %c0_9 = arith.constant 0 : index
    %30 = vector.load %arg4[%c0_8, %c0_9] : memref<8x256xf32, #tpu.memory_space<vmem>>, vector<8x256xf32>
    tpu.vector_store %arg4[%c0_8, %c0_9], %29 {strides = array<i32>} : memref<8x256xf32, #tpu.memory_space<vmem>>, vector<8x256xf32>,
    return
  }
  func.func @transform_0(%arg0: i32) -> (i32, i32) {
    %c0_i32 = arith.constant 0 : i32
    %c0_i32_0 = arith.constant 0 : i32
    return %arg0, %c0_i32 : i32, i32
  }
  func.func @transform_1(%arg0: i32) -> (i32, i32) {
    %c0_i32 = arith.constant 0 : i32
    %c0_i32_0 = arith.constant 0 : i32
    %c0_i32_1 = arith.constant 0 : i32
    return %c0_i32, %c0_i32_0 : i32, i32
  }
  func.func @transform_2(%arg0: i32) -> (i32, i32) {
    %c0_i32 = arith.constant 0 : i32
    %c0_i32_0 = arith.constant 0 : i32
    %c0_i32_1 = arith.constant 0 : i32
    return %c0_i32, %c0_i32_0 : i32, i32
  }
  func.func @transform_3(%arg0: i32) -> (i32, i32) {
    %c0_i32 = arith.constant 0 : i32
    %c0_i32_0 = arith.constant 0 : i32
    return %arg0, %c0_i32 : i32, i32
  }
}

</mosaic_0001>

<bundles_post_ra>
// kernel: tpu_custom_call.1
= control target key start
LH: loop header
LB: loop body
LE: loop exit
PB: predicated region body
PF: predicated region fallthrough
CT: control target
= control target key end

     0   :  { %s146_s0 = inlined_call_operand.vmem [shape: f32[8,256], index: 0, kind: input, shape index: {}]   ;;  %s147_s1 = inlined_call_operand.vmem [shape: f32[8,1], index: 1, kind: input, shape index: {}]   ;;  %s148_s2 = inlined_call_operand.vmem [shape: f32[8,1], index: 2, kind: input, shape index: {}]   ;;  %s149_s3 = inlined_call_operand.hbm [shape: f32[8,256], index: 3, kind: output, shape index: {}]  }
   0x1   :  { %v16_v0 = vld [vmem:[%s146_s0] sm:$0xff]  ;;  %v17_v1 = vld [vmem:[%s146_s0 + $0x8] sm:$0xff] }
   0x2   :  { %8 = vsyncpa [#allocation3], 0  ;;  %v18_v2 = vadd.f32 %v17_v1, %v16_v0  ;;  %v21_v3 = vmul.f32 %v16_v0, %v16_v0  ;;  %v22_v4 = vmul.f32 %v17_v1, %v17_v1  ;;  %v100_v6 = vmov 0   ;;  %v34_v15 = vld [vmem:[%s147_s1] sm:$0xff]  ;;  %s101_s19 = smov [#allocation2]  }
   0x3   :  { %72 = vset.pattern.permute.xlu1 %v100_v6  ;;  %73 = vset.pattern.permute.xlu0 %v100_v6  ;;  %v36_v18 = vld [vmem:[%s148_s2] sm:$0xff]  ;;  %s62_s20 = sshll.u32 %s101_s19, 4  ;;  %s63_s20 = int_to_ptr.vmem [resolvable:$true] %s62_s20 }
   0x4   :  { %19 = vadd.xlane.f32.xlu0 %v18_v2  ;;  %v23_v5 = vadd.f32 %v22_v4, %v21_v3  ;;  %s76_s1 = scalar_lea.vmem %s63_s20, 256  ;;  %p81_p1 = scmp.lt.s32.totalorder %s63_s20, %s63_s20 }
   0x5   :  { %p77_p0 = scmp.ne.s32.totalorder %s63_s20, %s76_s1  ;;  %p82_p2 = scmp.lt.s32.totalorder %s76_s1, %s76_s1 }
   0x7   :  { %p83_p3 = por %p82_p2, %p81_p1 }
   0x8   :  { %24 = vadd.xlane.f32.xlu0 %v23_v5 }
   0x9   :  { %p84_p4 = pnand %p83_p3, %p77_p0 }
  0x91   :  { %v20_v7 = vpop.xlane.xlu0 %19 }
  0x92   :  { %v26_v8 = vmul.f32 0.00390625, %v20_v7 }
  0x94   :  { %v28_v10 = vmul.f32 %v26_v8, %v26_v8 }
  0x95   :  { %v25_v9 = vpop.xlane.xlu0 %24 }
  0x96   :  { %v27_v11 = vmul.f32 0.00390625, %v25_v9 }
  0x98   :  { %v29_v12 = vsub.f32 %v27_v11, %v28_v10 }
  0x9a   :  { %v30_v13 = vmax.f32 %v29_v12, 0.0 }
  0x9c   :  { %v31_v14 = vadd.f32 1e-09, %v30_v13 }
  0x9e   :  { %74 = vrsqrt.f32 %v31_v14 }
  0xa8   :  { %v75_v16 = vpop.eup %74 }
  0xa9   :  { %v37_v17 = vmul.f32 %v75_v16, %v34_v15 }
  0xab   :  { %42 = vperm.xlu1 %72, %v37_v17   ;;  %v38_v19 = vmul.f32 %v37_v17, %v26_v8 }
  0xad   :  { %v39_v20 = vsub.f32 %v36_v18, %v38_v19 }
  0xaf   :  { %49 = vperm.xlu1 %72, %v39_v20  }
 0x12a   :  { %v43_v21 = vpop.permute.xlu1 %42 }
 0x12b   :  { %v45_v22 = vmul.f32 %v43_v21, %v16_v0  ;;  %v46_v23 = vmul.f32 %v43_v21, %v17_v1 }
 0x12e   :  { %v50_v24 = vpop.permute.xlu1 %49 }
 0x12f   :  { %v52_v25 = vadd.f32 %v50_v24, %v45_v22  ;;  %v53_v26 = vadd.f32 %v50_v24, %v46_v23 }
 0x131   :  { %54 = vst [vmem:[#allocation2] sm:$0xff] %v52_v25  ;;  %55 = vst [vmem:[#allocation2 + $0x8] sm:$0xff] %v53_v26 }
 0x132   :  { %87 = shalt.err (!%p84_p4)
}
 0x133   :  { %s88_s22 = scalar_lea.hbm %s149_s3, 256 }
 0x134   :  { %p89_p5 = scmp.ne.s32.totalorder %s149_s3, %s88_s22  ;;  %p92_p6 = scmp.lt.u32.totalorder %s88_s22, %s149_s3 }
 0x136   :  { %p94_p7 = pnand %p92_p6, %p89_p5 }
 0x138   :  { %97 = shalt.err (!%p94_p7)
}
 0x139   :  { %65 = dma.vmem_to_hbm [thread:$0]  %s63_s20, 256, %s149_s3, [#allocation3]  }
 0x13a   :  { %98 = dma.done.wait [#allocation3], 256  }
 0x13b   :  { %99 = vsyncadd [#allocation3], 4294967040 }
 0x13c   :  { %69 = vsyncpa [#allocation3], 1 }

</bundles_post_ra>
